<compile_context>
chip_gen: v5e
topology: v5e:2x2
jax: 0.10.0
libtpu: 0.0.40
codegen_flags: <defaults>
</compile_context>

<pallas_src>
import functools

import jax
import jax.numpy as jnp
from jax.experimental import pallas as pl
from jax.experimental.pallas import tpu as pltpu

EPS = 1e-5
_MIB = 1024 * 1024


def _tpu_vmem_bytes():
    try:
        return int(pltpu.get_tpu_info().vmem_capacity_bytes)
    except Exception:
        return 64 * _MIB  # conservative fallback (v7x per-TensorCore VMEM)


def _sublane_multiple(dtype):
    # Second-minor block dim must be a multiple of 8 (f32) / 16 (bf16) / 32 (int8)
    # unless it equals the full array dim.
    return {4: 8, 2: 16, 1: 32}.get(jnp.dtype(dtype).itemsize, 8)


def _tc_candidates(bc, mult):
    cands = {t for t in range(mult, bc + 1, mult) if bc % t == 0}
    cands.add(bc)  # full-dim channel tile is always layout-legal
    return sorted(cands)


# ----------------------------- kernels -----------------------------


def _bn_fused_kernel(gamma_ref, beta_ref, x_ref, o_ref, *, inv_count, eps):
    # gamma_ref/beta_ref: (TC, 1) f32; x_ref/o_ref: (N, TC, HW) lane-dense blocks.
    x = x_ref[...].astype(jnp.float32)
    s = jnp.sum(jnp.sum(x, axis=2, keepdims=True), axis=0, keepdims=True)      # (1,TC,1)
    q = jnp.sum(jnp.sum(x * x, axis=2, keepdims=True), axis=0, keepdims=True)  # (1,TC,1)
    mean = s * inv_count
    var = jnp.maximum(q * inv_count - mean * mean, 0.0)    # biased var (PyTorch BN fwd)
    inv_std = jax.lax.rsqrt(var + eps)
    scale = gamma_ref[...][None] * inv_std                 # (1, TC, 1)
    shift = beta_ref[...][None] - mean * scale             # (1, TC, 1)
    o_ref[...] = (x * scale + shift).astype(o_ref.dtype)


def _bn_stats_kernel(x_ref, sum_ref, sq_ref):
    # x_ref: (TN, TC, HW); sum_ref/sq_ref: (TC, 1) f32 accumulators, resident
    # across the batch-chunk (reduction) axis.
    @pl.when(pl.program_id(1) == 0)
    def _init():
        sum_ref[...] = jnp.zeros_like(sum_ref)
        sq_ref[...] = jnp.zeros_like(sq_ref)

    x = x_ref[...].astype(jnp.float32)
    sum_ref[...] += jnp.sum(jnp.sum(x, axis=2, keepdims=True), axis=0)      # (TC, 1)
    sq_ref[...] += jnp.sum(jnp.sum(x * x, axis=2, keepdims=True), axis=0)   # (TC, 1)


def _bn_apply_kernel(scale_ref, shift_ref, x_ref, o_ref):
    # scale_ref/shift_ref: (TC, 1) f32; x_ref/o_ref: (TN, TC, HW).
    x = x_ref[...].astype(jnp.float32)
    scale = scale_ref[...][None]                 # (1, TC, 1) sublane broadcast
    shift = shift_ref[...][None]
    o_ref[...] = (x * scale + shift).astype(o_ref.dtype)


# ----------------------------- wrapper -----------------------------


def groupy_bn_forward(x, gamma, beta, channels=8, eps=EPS, force_two_pass=False):
    """x: (N, C, G, H, W); gamma/beta: (C*G,). Returns (N, (C*G)//channels, channels, H, W)."""
    N, C, G, H, W = x.shape
    BC = C * G
    HW = H * W
    assert BC % channels == 0

    # Free view: merge G into channels and H,W into one lane-dense minor dim.
    x3 = x.reshape(N, BC, HW)

    itemsize = jnp.dtype(x.dtype).itemsize
    mult = _sublane_multiple(x.dtype)
    cands = _tc_candidates(BC, mult)

    vmem_cap = _tpu_vmem_bytes()
    vmem_cap_budget = int(0.85 * vmem_cap)
    # Heuristic: small per-core VMEM (64 MiB) => v7x, which has 2 TensorCores, so
    # keep >= 2 channel tiles for megacore sharding; v5e/v6e (128 MiB) are 1-TC.
    prefer_multi = vmem_cap < 96 * _MIB

    gamma_f = gamma.astype(jnp.float32).reshape(BC, 1)
    beta_f = beta.astype(jnp.float32).reshape(BC, 1)
    inv_count = 1.0 / float(N * HW)

    # ---- Fused single-pass path: whole-batch channel slab resident in VMEM. ----
    # Footprint: 2x(in) + 2x(out) double-buffered slabs + ~2 f32 temporaries.
    def _fused_need(tc):
        slab_x = N * tc * HW * itemsize
        slab_f = N * tc * HW * 4
        return 4 * slab_x + 2 * slab_f + _MIB

    fused_budget = int(0.6 * vmem_cap)
    order = sorted(cands, reverse=True)
    if prefer_multi:
        order = (sorted([t for t in cands if BC // t >= 2], reverse=True)
                 + sorted([t for t in cands if BC // t < 2], reverse=True))
    fused_tc = None
    if not force_two_pass:
        for t in order:
            if _fused_need(t) <= fused_budget:
                fused_tc = t
                break

    if fused_tc is not None:
        tc = fused_tc
        n_ct = BC // tc
        limit = int(min(vmem_cap_budget, max(_fused_need(tc) + 4 * _MIB, 16 * _MIB)))
        y3 = pl.pallas_call(
            functools.partial(_bn_fused_kernel, inv_count=inv_count, eps=eps),
            out_shape=jax.ShapeDtypeStruct((N, BC, HW), x.dtype),
            grid=(n_ct,),
            in_specs=[
                pl.BlockSpec((tc, 1), lambda c: (c, 0)),          # gamma
                pl.BlockSpec((tc, 1), lambda c: (c, 0)),          # beta
                pl.BlockSpec((N, tc, HW), lambda c: (0, c, 0)),   # x slab
            ],
            out_specs=pl.BlockSpec((N, tc, HW), lambda c: (0, c, 0)),
            compiler_params=pltpu.CompilerParams(
                dimension_semantics=("parallel",),
                vmem_limit_bytes=limit),
        )(gamma_f, beta_f, x3)
        return y3.reshape(N, BC // channels, channels, H, W)

    # ---- Two-pass fallback: stats -> tiny finalize -> apply. ----
    small = [t for t in cands if t <= 256] or cands
    tc = max(small)
    if prefer_multi:
        multi = [t for t in small if BC // t >= 2]
        if multi:
            tc = max(multi)
    n_ct = BC // tc

    # Batch chunk sized so a (tn, tc, HW) f32 block stays within the per-block
    # budget; the apply pass double-buffers BOTH input and output.
    block_budget = 6 * _MIB if prefer_multi else 12 * _MIB
    per_n = tc * HW * 4
    tn = 1
    for cand in range(1, N + 1):
        if N % cand == 0 and cand * per_n <= block_budget:
            tn = cand
    n_nt = N // tn

    block_x = tn * tc * HW * itemsize
    block_f = tn * tc * HW * 4
    needed = 4 * block_x + 2 * block_f + 2 * _MIB
    limit = int(min(vmem_cap_budget, max(needed, 16 * _MIB)))

    # Pass 1: per-channel sum / sum-of-squares over (N, H, W).
    sums, sumsq = pl.pallas_call(
        _bn_stats_kernel,
        out_shape=(jax.ShapeDtypeStruct((BC, 1), jnp.float32),
                   jax.ShapeDtypeStruct((BC, 1), jnp.float32)),
        grid=(n_ct, n_nt),
        in_specs=[pl.BlockSpec((tn, tc, HW), lambda c, n: (n, c, 0))],
        out_specs=(pl.BlockSpec((tc, 1), lambda c, n: (c, 0)),
                   pl.BlockSpec((tc, 1), lambda c, n: (c, 0))),
        compiler_params=pltpu.CompilerParams(
            dimension_semantics=("parallel", "arbitrary"),
            vmem_limit_bytes=limit),
    )(x3)

    # Tiny O(BC) finalize: fold mean/var/gamma/beta into per-channel scale & shift.
    mean = sums[:, 0] * inv_count
    var = jnp.maximum(sumsq[:, 0] * inv_count - mean * mean, 0.0)
    inv_std = jax.lax.rsqrt(var + eps)
    scale = (gamma.astype(jnp.float32) * inv_std).reshape(BC, 1)
    shift = (beta.astype(jnp.float32).reshape(BC, 1) - mean.reshape(BC, 1) * scale)

    # Pass 2: y = x * scale + shift (native lane-dense layout in/out).
    y3 = pl.pallas_call(
        _bn_apply_kernel,
        out_shape=jax.ShapeDtypeStruct((N, BC, HW), x.dtype),
        grid=(n_ct, n_nt),
        in_specs=[
            pl.BlockSpec((tc, 1), lambda c, n: (c, 0)),          # scale
            pl.BlockSpec((tc, 1), lambda c, n: (c, 0)),          # shift
            pl.BlockSpec((tn, tc, HW), lambda c, n: (n, c, 0)),  # x
        ],
        out_specs=pl.BlockSpec((tn, tc, HW), lambda c, n: (n, c, 0)),
        compiler_params=pltpu.CompilerParams(
            dimension_semantics=("parallel", "parallel"),
            vmem_limit_bytes=limit),
    )(scale, shift, x3)

    return y3.reshape(N, BC // channels, channels, H, W)


# ----------------------------- reference & test -----------------------------


def _reference(x, gamma, beta, channels=8):
    N, C, G, H, W = x.shape
    x4 = x.reshape(N, C * G, H, W)
    mean = jnp.mean(x4, axis=(0, 2, 3), keepdims=True)
    var = jnp.mean((x4 - mean) ** 2, axis=(0, 2, 3), keepdims=True)
    y = (x4 - mean) / jnp.sqrt(var + EPS)
    y = y * gamma[None, :, None, None] + beta[None, :, None, None]
    return y.reshape(N, (C * G) // channels, channels, H, W)


if __name__ == "__main__":
    # Small shapes consistent with p4m group-conv features: group size G == channels == 8.
    N, C, G, H, W = 2, 4, 8, 16, 16
    channels = 8
    batch_channels = C * G  # == BatchNorm2d(batch_channels)

    key = jax.random.PRNGKey(0)
    kx, kg, kb = jax.random.split(key, 3)
    x = jax.random.normal(kx, (N, C, G, H, W), dtype=jnp.float32)
    # PyTorch defaults are ones/zeros; use non-trivial deterministic values so the
    # affine scale/shift path is exercised.
    gamma = 1.0 + 0.1 * jax.random.normal(kg, (batch_channels,), dtype=jnp.float32)
    beta = 0.1 * jax.random.normal(kb, (batch_channels,), dtype=jnp.float32)

    y_ref = _reference(x, gamma, beta, channels=channels)

    # Fused single-pass path (default for small inputs).
    y = jax.block_until_ready(groupy_bn_forward(x, gamma, beta, channels=channels))
    assert y.shape == (N, batch_channels // channels, channels, H, W)
    assert jnp.allclose(y, y_ref, rtol=1e-4, atol=1e-4), "fused path mismatch vs reference"

    # Two-pass path (large-input fallback), exercised explicitly for coverage.
    y2 = jax.block_until_ready(
        groupy_bn_forward(x, gamma, beta, channels=channels, force_two_pass=True))
    assert jnp.allclose(y2, y_ref, rtol=1e-4, atol=1e-4), "two-pass path mismatch vs reference"

    print("KERNEL_OK")
</pallas_src>

<mosaic_0001>
module attributes {stable_mosaic.version = 11 : i64} {
  func.func @_bn_fused_kernel(%arg0: i32, %arg1: memref<16x1xf32, #tpu.memory_space<vmem>>, %arg2: memref<16x1xf32, #tpu.memory_space<vmem>>, %arg3: memref<2x16x256xf32, #tpu.memory_space<vmem>>, %arg4: memref<2x16x256xf32, #tpu.memory_space<vmem>>) attributes {dimension_semantics = [#tpu.dimension_semantics<parallel>], iteration_bounds = array<i64: 2>, scalar_prefetch = 0 : i64, scratch_operands = 0 : i64, tpu.core_type = #tpu.core_type<tc>, window_params = [{transform_indices = @transform_0, window_bounds = array<i64: 16, 1>}, {transform_indices = @transform_1, window_bounds = array<i64: 16, 1>}, {transform_indices = @transform_2, window_bounds = array<i64: 2, 16, 256>}, {transform_indices = @transform_3, window_bounds = array<i64: 2, 16, 256>}]} {
    %c0 = arith.constant 0 : index
    %c0_0 = arith.constant 0 : index
    %c0_1 = arith.constant 0 : index
    %0 = vector.load %arg3[%c0, %c0_0, %c0_1] : memref<2x16x256xf32, #tpu.memory_space<vmem>>, vector<2x16x256xf32>
    %cst = arith.constant dense<0.000000e+00> : vector<2x16xf32>
    %1 = vector.multi_reduction <add>, %0, %cst [2] : vector<2x16x256xf32> to vector<2x16xf32>
    %2 = vector.shape_cast %1 : vector<2x16xf32> to vector<2x16x1xf32>
    %cst_2 = arith.constant dense<0.000000e+00> : vector<16x1xf32>
    %3 = vector.multi_reduction <add>, %2, %cst_2 [0] : vector<2x16x1xf32> to vector<16x1xf32>
    %4 = vector.shape_cast %3 : vector<16x1xf32> to vector<1x16x1xf32>
    %5 = arith.mulf %0, %0 : vector<2x16x256xf32>
    %cst_3 = arith.constant dense<0.000000e+00> : vector<2x16xf32>
    %6 = vector.multi_reduction <add>, %5, %cst_3 [2] : vector<2x16x256xf32> to vector<2x16xf32>
    %7 = vector.shape_cast %6 : vector<2x16xf32> to vector<2x16x1xf32>
    %cst_4 = arith.constant dense<0.000000e+00> : vector<16x1xf32>
    %8 = vector.multi_reduction <add>, %7, %cst_4 [0] : vector<2x16x1xf32> to vector<16x1xf32>
    %9 = vector.shape_cast %8 : vector<16x1xf32> to vector<1x16x1xf32>
    %cst_5 = arith.constant 0.001953125 : f32
    %10 = vector.broadcast %cst_5 : f32 to vector<1x16x1xf32>
    %11 = arith.mulf %4, %10 : vector<1x16x1xf32>
    %cst_6 = arith.constant 0.001953125 : f32
    %12 = vector.broadcast %cst_6 : f32 to vector<1x16x1xf32>
    %13 = arith.mulf %9, %12 : vector<1x16x1xf32>
    %14 = arith.mulf %11, %11 : vector<1x16x1xf32>
    %15 = arith.subf %13, %14 : vector<1x16x1xf32>
    %cst_7 = arith.constant 0.000000e+00 : f32
    %16 = vector.broadcast %cst_7 : f32 to vector<1x16x1xf32>
    %17 = arith.maximumf %15, %16 : vector<1x16x1xf32>
    %cst_8 = arith.constant 9.99999974E-6 : f32
    %18 = vector.broadcast %cst_8 : f32 to vector<1x16x1xf32>
    %19 = arith.addf %17, %18 : vector<1x16x1xf32>
    %20 = math.rsqrt %19 : vector<1x16x1xf32>
    %c0_9 = arith.constant 0 : index
    %c0_10 = arith.constant 0 : index
    %21 = vector.load %arg1[%c0_9, %c0_10] : memref<16x1xf32, #tpu.memory_space<vmem>>, vector<16x1xf32>
    %22 = vector.shape_cast %21 : vector<16x1xf32> to vector<1x16x1xf32>
    %23 = arith.mulf %22, %20 : vector<1x16x1xf32>
    %c0_11 = arith.constant 0 : index
    %c0_12 = arith.constant 0 : index
    %24 = vector.load %arg2[%c0_11, %c0_12] : memref<16x1xf32, #tpu.memory_space<vmem>>, vector<16x1xf32>
    %25 = vector.shape_cast %24 : vector<16x1xf32> to vector<1x16x1xf32>
    %26 = arith.mulf %11, %23 : vector<1x16x1xf32>
    %27 = arith.subf %25, %26 : vector<1x16x1xf32>
    %28 = vector.broadcast %23 : vector<1x16x1xf32> to vector<2x16x256xf32>
    %29 = arith.mulf %0, %28 : vector<2x16x256xf32>
    %30 = vector.broadcast %27 : vector<1x16x1xf32> to vector<2x16x256xf32>
    %31 = arith.addf %29, %30 : vector<2x16x256xf32>
    %c0_13 = arith.constant 0 : index
    %c0_14 = arith.constant 0 : index
    %c0_15 = arith.constant 0 : index
    %32 = vector.load %arg4[%c0_13, %c0_14, %c0_15] : memref<2x16x256xf32, #tpu.memory_space<vmem>>, vector<2x16x256xf32>
    tpu.vector_store %arg4[%c0_13, %c0_14, %c0_15], %31 {strides = array<i32>} : memref<2x16x256xf32, #tpu.memory_space<vmem>>, vector<2x16x256xf32>,
    return
  }
  func.func @transform_0(%arg0: i32) -> (i32, i32) {
    %c0_i32 = arith.constant 0 : i32
    %c0_i32_0 = arith.constant 0 : i32
    return %arg0, %c0_i32 : i32, i32
  }
  func.func @transform_1(%arg0: i32) -> (i32, i32) {
    %c0_i32 = arith.constant 0 : i32
    %c0_i32_0 = arith.constant 0 : i32
    return %arg0, %c0_i32 : i32, i32
  }
  func.func @transform_2(%arg0: i32) -> (i32, i32, i32) {
    %c0_i32 = arith.constant 0 : i32
    %c0_i32_0 = arith.constant 0 : i32
    %c0_i32_1 = arith.constant 0 : i32
    return %c0_i32, %arg0, %c0_i32_0 : i32, i32, i32
  }
  func.func @transform_3(%arg0: i32) -> (i32, i32, i32) {
    %c0_i32 = arith.constant 0 : i32
    %c0_i32_0 = arith.constant 0 : i32
    %c0_i32_1 = arith.constant 0 : i32
    return %c0_i32, %arg0, %c0_i32_0 : i32, i32, i32
  }
}

</mosaic_0001>

<bundles_post_ra>
// kernel: tpu_custom_call.1
= control target key start
LH: loop header
LB: loop body
LE: loop exit
PB: predicated region body
PF: predicated region fallthrough
CT: control target
= control target key end

     0   :  { %8 = vsyncpa [#allocation3], 0  ;;  %s892_s0 = inlined_call_operand.vmem [shape: f32[32,1], index: 0, kind: input, shape index: {}]   ;;  %s893_s1 = inlined_call_operand.vmem [shape: f32[32,1], index: 1, kind: input, shape index: {}]   ;;  %s894_s2 = inlined_call_operand.hbm [shape: f32[2,32,256], index: 2, kind: input, shape index: {}]   ;;  %s895_s3 = inlined_call_operand.hbm [shape: f32[2,32,256], index: 3, kind: output, shape index: {}]  }
   0x1   :  { %10 = vsyncpa [#allocation3 + $0x1], 0 }
   0x2   :  { %11 = vsyncpa [#allocation4], 0 }
   0x3   :  { %13 = vsyncpa [#allocation4 + $0x1], 0  ;;  %s705_s12 = smov 0   ;;  %s707_s13 = smov 0  }
   0x4   :  { %s709_s14 = smov 0   ;;  %s711_s15 = smov 0  }
   0x5 LB: > { %s726_s16 = sadd.s32 4294967295, %s669_s15   ;;  %s530_s17 = sadd.s32 4294967294, %s669_s15   ;;  %s669_s15 = sphi %s711_s15, %s903_s15   ;;  %s665_s14 = sphi %s709_s14, %s902_s14   ;;  %s661_s13 = sphi %s707_s13, %s901_s13   ;;  %s657_s12 = sphi %s705_s12, %s900_s12  }
   0x6   : > { %s730_s18 = sadd.s32 1, %s669_s15   ;;  %s78_s19 = sadd.s32 1, %s665_s14 }
   0x7   : > { %s75_s20 = ssub.s32 %s669_s15, %s730_s18  ;;  %p85_p0 = scmp.ne.s32.totalorder %s665_s14, %s661_s13 }
   0x8   : > { %p76_p1 = scmp.eq.s32.totalorder %s75_s20, 0  ;;  %p86_p2 = scmp.eq.s32.totalorder %s669_s15, 0 }
   0x9   : > { %p91_p3 = scmp.ne.s32.totalorder %s661_s13, %s657_s12  ;;  %p92_p4 = scmp.eq.s32.totalorder %s726_s16, 0 }
   0xa   : > { %s742_s21 = scalar_select %p76_p1, %s665_s14, %s78_s19  }
   0xb   : > { %p744_p5 = por %p86_p2, %p85_p0  ;;  %p748_p6 = por %p92_p4, %p91_p3 }
   0xc   : > { %p115_p7 = scmp.eq.s32.totalorder %s726_s16, 1  ;;  %p121_p8 = scmp.eq.s32.totalorder %s530_s17, 1 }
   0xd   : > { %p532_p11 = scmp.ge.s32.totalorder %s669_s15, 2 }
   0xe   : > { %p753_p9 = por %p115_p7, %p85_p0  ;;  %p757_p10 = por %p121_p8, %p91_p3 }
   0xf   : > { %137 = sbr.rel (%p532_p11) target bundleno = 34 (0x22), region = 16 }
  0x14   : > { %s159_s26 = sand.u32 1, %s665_s14   ;;  %s553_s27 = sshll.u32 %s669_s15, 5 }
  0x15   : > { %s533_s28 = sshll.u32 %s159_s26, 6  ;;  %s169_s4 = scalar_lea.hbm %s894_s2, %s553_s27 }
  0x16   : > { %s556_s5 = scalar_select %p744_p5, [#allocation0], [#allocation10] }
  0x17   : > { %s182_s6 = sshll.u32 %s169_s4, 4  ;;  %s163_s7 = scalar_lea.vmem [#allocation2], %s533_s28  ;;  %s183_s6 = int_to_ptr.hbm [resolvable:$true] %s182_s6 }
  0x18   : > { %s184_s8 = sshll.u32 %s163_s7, 4  ;;  %s174_s9 = sld [smem:[%s556_s5]]   ;;  %s185_s8 = int_to_ptr.vmem [resolvable:$true] %s184_s8 }
  0x19   : > { %s671_s10 = smov 1024   ;;  %s672_s11 = smov 512  }
  0x1a   : > { %557 = sst [smem:[#allocation7]] (%p744_p5), %s671_s10  ;;  %s673_s17 = smov 2  }
  0x1b   : > { %558 = sst [smem:[#allocation7 + $0x1]] (%p744_p5), %s672_s11  ;;  %s674_s19 = smov 256  }
  0x1c   : > { %559 = sst [smem:[#allocation7 + $0x2]] (%p744_p5), %s673_s17  ;;  %s675_s28 = smov 16  }
  0x1d   : > { %560 = sst [smem:[#allocation7 + $0x3]] (%p744_p5), %s674_s19  ;;  %s160_s29 = scalar_lea.sflag [#allocation3], %s159_s26 }
  0x1e   : > { %s537_s20 = sshll.u32 %s174_s9, 26  ;;  %561 = sst [smem:[#allocation7 + $0x4]] (%p744_p5), %s674_s19 }
  0x1f   : > { %s538_s27 = sadd.s32 134217728, %s537_s20  ;;  %562 = sst [smem:[#allocation7 + $0x5]] (%p744_p5), %s675_s28 }
  0x20   : > { %s676_s30 = smov [#allocation6]  }
  0x21   : > { %563 = dma.general (%p744_p5), %s183_s6, 1024, %s185_s8, %s160_s29, %s676_s30, [#allocation7], %s538_s27, 0  }
  0x22 PF: > { %p539_p12 = scmp.ge.s32.totalorder %s669_s15, 1  ;;  %p205_p13 = scmp.lt.s32.totalorder %s669_s15, 3 }
  0x24   : > { %p206_p0 = pnand %p539_p12, %p205_p13 }
  0x25   : > { %s788_s4 = sand.u32 (!%p206_p0), 1, %s661_s13  }
  0x26   : > { %209 = sbr.rel (%p206_p0) target bundleno = 346 (0x15a), region = 32  ;;  %s540_s5 = sshll.u32 (!%p206_p0), %s788_s4, 6 }
  0x27   : > { %s212_s7 = scalar_lea.sflag (!%p206_p0), [#allocation3], %s788_s4  ;;  %s215_s26 = scalar_lea.vmem (!%p206_p0), [#allocation2], %s540_s5 }
  0x2b   : > { %648 = dma.done.wait (%p748_p6), %s212_s7, 1024  }
  0x2c   : > { %650 = vsyncadd (%p748_p6), %s212_s7, 4294966272  ;;  %v798_v0 = vld [vmem:[%s215_s26 + $0x20] sm:$0xff]  ;;  %v800_v1 = vld [vmem:[%s215_s26 + $0x28] sm:$0xff]  ;;  %v677_v28 = vmov 0   ;;  %s542_s22 = sshll.u32 %s726_s16, 1  ;;  %s248_s19 = scalar_lea.vmem [#allocation5], %s540_s5 }
  0x2d   : > { %v802_v2 = vld [vmem:[%s215_s26] sm:$0xff]  ;;  %v277_v3 = vadd.f32 %v800_v1, %v798_v0  ;;  %v806_v4 = vld [vmem:[%s215_s26 + $0x8] sm:$0xff]  ;;  %v814_v8 = vld [vmem:[%s215_s26 + $0x30] sm:$0xff]  ;;  %v289_v20 = vmul.f32 %v798_v0, %v798_v0  ;;  %v290_v21 = vmul.f32 %v800_v1, %v800_v1  ;;  %625 = vset.pattern.permute.xlu0 %v677_v28  ;;  %624 = vset.pattern.permute.xlu2 %v677_v28  ;;  %p250_p1 = scmp.lt.s32.totalorder %s542_s22, 3  ;;  %s394_s20 = scalar_lea.sflag [#allocation4], %s788_s4 }
  0x2e   : > { %v285_v5 = vmul.f32 %v802_v2, %v802_v2  ;;  %v271_v6 = vadd.f32 %v806_v4, %v802_v2  ;;  %v286_v7 = vmul.f32 %v806_v4, %v806_v4  ;;  %v816_v9 = vld [vmem:[%s215_s26 + $0x38] sm:$0xff]  ;;  %v818_v11 = vld [vmem:[%s215_s26 + $0x10] sm:$0xff]  ;;  %v291_v18 = vmul.f32 %v814_v8, %v814_v8  ;;  %626 = vset.pattern.permute.xlu1 %v677_v28 }
  0x2f   : > { %278 = vadd.xlane.f32.xlu1 %v277_v3  ;;  %v820_v12 = vld [vmem:[%s215_s26 + $0x18] sm:$0xff]  ;;  %v287_v13 = vmul.f32 %v818_v11, %v818_v11  ;;  %v280_v15 = vadd.f32 %v816_v9, %v814_v8  ;;  %v292_v19 = vmul.f32 %v816_v9, %v816_v9  ;;  %v299_v23 = vadd.f32 %v290_v21, %v289_v20  ;;  %s905_s22 = smov (!%p250_p1, %s542_s22), 3 }
  0x30   : > { %272 = vadd.xlane.f32.xlu0 %v271_v6  ;;  %v293_v10 = vadd.f32 %v286_v7, %v285_v5  ;;  %v288_v14 = vmul.f32 %v820_v12, %v820_v12  ;;  %v274_v16 = vadd.f32 %v820_v12, %v818_v11  ;;  %s543_s23 = sshll.u32 %s905_s22, 3 }
  0x31   : > { %v302_v22 = vadd.f32 %v292_v19, %v291_v18  ;;  %s253_s9 = scalar_lea.vmem %s892_s0, %s543_s23  ;;  %s259_s17 = scalar_lea.vmem %s893_s1, %s543_s23 }
  0x32   : > { %294 = vadd.xlane.f32.xlu2 %v293_v10  ;;  %v296_v17 = vadd.f32 %v288_v14, %v287_v13  ;;  %v340_v60 = vld [vmem:[%s253_s9 + $0x8] sm:$0xff]  ;;  %v339_v62 = vld [vmem:[%s253_s9] sm:$0xff] }
  0x33   : > { %v343_v7 = vld [vmem:[%s259_s17] sm:$0xff] }
  0x37   : > { %281 = vadd.xlane.f32.xlu1 %v280_v15  ;;  %v344_v15 = vld [vmem:[%s259_s17 + $0x8] sm:$0xff] }
  0x38   : > { %275 = vadd.xlane.f32.xlu0 %v274_v16 }
  0x3a   : > { %297 = vadd.xlane.f32.xlu2 %v296_v17 }
  0x3f   : > { %303 = vadd.xlane.f32.xlu1 %v302_v22 }
  0x40   : > { %300 = vadd.xlane.f32.xlu0 %v299_v23 }
  0xa2   : > { %v279_v24 = vpop.xlane.xlu1 %278 }
  0xa3   : > { %v273_v25 = vpop.xlane.xlu0 %272 }
  0xa4   : > { %v283_v31 = vadd.f32 %v279_v24, %v273_v25 }
  0xa5   : > { %v295_v26 = vpop.xlane.xlu2 %294 }
  0xa6   : > { %v307_v34 = vmul.f32 0.001953125, %v283_v31 }
  0xa8   : > { %v311_v41 = vmul.f32 %v307_v34, %v307_v34 }
  0xaa   : > { %v282_v27 = vpop.xlane.xlu1 %281 }
  0xab   : > { %v276_v29 = vpop.xlane.xlu0 %275 }
  0xac   : > { %v284_v30 = vadd.f32 %v282_v27, %v276_v29 }
  0xad   : > { %v298_v32 = vpop.xlane.xlu2 %297 }
  0xae   : > { %v308_v33 = vmul.f32 0.001953125, %v284_v30 }
  0xb0   : > { %v312_v39 = vmul.f32 %v308_v33, %v308_v33 }
  0xb2   : > { %v304_v35 = vpop.xlane.xlu1 %303 }
  0xb3   : > { %v306_v36 = vadd.f32 %v304_v35, %v298_v32  ;;  %v301_v37 = vpop.xlane.xlu0 %300 }
  0xb4   : > { %v305_v38 = vadd.f32 %v301_v37, %v295_v26 }
  0xb5   : > { %v310_v40 = vmul.f32 0.001953125, %v306_v36 }
  0xb6   : > { %v309_v42 = vmul.f32 0.001953125, %v305_v38 }
  0xb7   : > { %v314_v43 = vsub.f32 %v310_v40, %v312_v39 }
  0xb8   : > { %v313_v44 = vsub.f32 %v309_v42, %v311_v41 }
  0xb9   : > { %v316_v45 = vmax.f32 %v314_v43, 0.0 }
  0xba   : > { %v315_v46 = vmax.f32 %v313_v44, 0.0 }
  0xbb   : > { %v318_v47 = vadd.f32 1e-05, %v316_v45 }
  0xbc   : > { %v317_v48 = vadd.f32 1e-05, %v315_v46 }
  0xbd   : > { %627 = vrsqrt.f32 %v318_v47  ;;  %vm335_vm2 = vweird.f32 %v318_v47 }
  0xbe   : > { %629 = vrsqrt.f32 %v317_v48  ;;  %vm325_vm4 = vweird.f32 %v317_v48 }
  0xc3   : > { %v628_v49 = vpop.eup %627 }
  0xc4   : > { %v630_v50 = vpop.eup %629  ;;  %v330_v51 = vmul.f32 %v628_v49, %v318_v47  ;;  %vm336_vm0 = vweird.f32 %v628_v49 }
  0xc5   : > { %v320_v52 = vmul.f32 %v630_v50, %v317_v48  ;;  %vm326_vm1 = vweird.f32 %v630_v50  ;;  %vm337_vm3 = vmor %vm335_vm2, %vm336_vm0 }
  0xc6   : > { %v331_v53 = vmul.f32 %v628_v49, %v330_v51  ;;  %vm327_vm5 = vmor %vm325_vm4, %vm326_vm1 }
  0xc7   : > { %v321_v54 = vmul.f32 %v630_v50, %v320_v52 }
  0xc8   : > { %v332_v55 = vmul.f32 0.5, %v331_v53 }
  0xc9   : > { %v322_v56 = vmul.f32 0.5, %v321_v54 }
  0xca   : > { %v333_v57 = vsub.f32 1.5, %v332_v55 }
  0xcb   : > { %v323_v58 = vsub.f32 1.5, %v322_v56 }
  0xcc   : > { %v334_v59 = vmul.f32 %v628_v49, %v333_v57 }
  0xcd   : > { %v324_v61 = vmul.f32 %v630_v50, %v323_v58 }
  0xce   : > { %v338_v63 = vsel %vm337_vm3, %v628_v49, %v334_v59 }
  0xcf   : > { %v342_v3 = vmul.f32 %v340_v60, %v338_v63  ;;  %v328_v5 = vsel %vm327_vm5, %v630_v50, %v324_v61 }
  0xd0   : > { %v341_v6 = vmul.f32 %v339_v62, %v328_v5 }
  0xd1   : > { %356 = vperm.xlu0 %625, %v342_v3   ;;  %v346_v14 = vmul.f32 %v342_v3, %v308_v33 }
  0xd2   : > { %351 = vperm.xlu2 %624, %v341_v6   ;;  %v345_v10 = vmul.f32 %v341_v6, %v307_v34 }
  0xd3   : > { %v348_v16 = vsub.f32 %v344_v15, %v346_v14 }
  0xd4   : > { %v347_v13 = vsub.f32 %v343_v7, %v345_v10 }
  0xd6   : > { %369 = vperm.xlu1 %626, %v347_v13  }
  0xda   : > { %374 = vperm.xlu2 %624, %v348_v16  }
 0x12c   : > { %v352_v17 = vpop.permute.xlu2 %351 }
 0x12d   : > { %v359_v28 = vmul.f32 %v352_v17, %v802_v2  ;;  %v360_v29 = vmul.f32 %v352_v17, %v806_v4 }
 0x134   : > { %v375_v23 = vpop.permute.xlu2 %374 }
 0x143   : > { %v357_v18 = vpop.permute.xlu0 %356 }
 0x144   : > { %v361_v19 = vmul.f32 %v357_v18, %v818_v11  ;;  %v362_v20 = vmul.f32 %v357_v18, %v820_v12  ;;  %v365_v21 = vmul.f32 %v357_v18, %v814_v8  ;;  %v366_v22 = vmul.f32 %v357_v18, %v816_v9 }
 0x145   : > { %v363_v11 = vmul.f32 %v352_v17, %v798_v0  ;;  %v364_v8 = vmul.f32 %v352_v17, %v800_v1 }
 0x146   : > { %v379_v24 = vadd.f32 %v375_v23, %v361_v19  ;;  %v380_v25 = vadd.f32 %v375_v23, %v362_v20  ;;  %v383_v26 = vadd.f32 %v375_v23, %v365_v21  ;;  %v384_v27 = vadd.f32 %v375_v23, %v366_v22 }
 0x148   : > { %387 = vst [vmem:[%s248_s19 + $0x10] sm:$0xff] %v379_v24  ;;  %v370_v12 = vpop.permute.xlu1 %369 }
 0x149   : > { %388 = vst [vmem:[%s248_s19 + $0x18] sm:$0xff] %v380_v25  ;;  %v377_v9 = vadd.f32 %v370_v12, %v359_v28  ;;  %v378_v30 = vadd.f32 %v370_v12, %v360_v29  ;;  %v381_v31 = vadd.f32 %v370_v12, %v363_v11  ;;  %v382_v32 = vadd.f32 %v370_v12, %v364_v8 }
 0x14a   : > { %391 = vst [vmem:[%s248_s19 + $0x30] sm:$0xff] %v383_v26 }
 0x14b   : > { %392 = vst [vmem:[%s248_s19 + $0x38] sm:$0xff] %v384_v27 }
 0x14c   : > { %385 = vst [vmem:[%s248_s19] sm:$0xff] %v377_v9 }
 0x14d   : > { %386 = vst [vmem:[%s248_s19 + $0x8] sm:$0xff] %v378_v30 }
 0x14e   : > { %389 = vst [vmem:[%s248_s19 + $0x20] sm:$0xff] %v381_v31 }
 0x14f   : > { %390 = vst [vmem:[%s248_s19 + $0x28] sm:$0xff] %v382_v32 }
 0x150   : > { %s555_s27 = sshll.u32 %s726_s16, 5  ;;  %s417_s28 = sshll.u32 %s248_s19, 4  ;;  %s418_s28 = int_to_ptr.vmem [resolvable:$true] %s417_s28 }
 0x151   : > { %s406_s5 = scalar_lea.hbm %s895_s3, %s555_s27  ;;  %s678_s26 = smov 512  }
 0x152   : > { %s419_s7 = sshll.u32 %s406_s5, 4  ;;  %565 = sst [smem:[#allocation9]] (%p753_p9), %s678_s26  ;;  %s420_s7 = int_to_ptr.hbm [resolvable:$true] %s419_s7 }
 0x153   : > { %s679_s4 = smov 1024   ;;  %s680_s22 = smov 2  }
 0x154   : > { %566 = sst [smem:[#allocation9 + $0x1]] (%p753_p9), %s679_s4  ;;  %s681_s16 = smov 256  }
 0x155   : > { %567 = sst [smem:[#allocation9 + $0x2]] (%p753_p9), %s680_s22  ;;  %s682_s23 = smov 16  }
 0x156   : > { %568 = sst [smem:[#allocation9 + $0x3]] (%p753_p9), %s681_s16  ;;  %s683_s6 = smov [#allocation8]  }
 0x157   : > { %569 = sst [smem:[#allocation9 + $0x4]] (%p753_p9), %s681_s16  ;;  %s684_s8 = smov 0  }
 0x158   : > { %570 = sst [smem:[#allocation9 + $0x5]] (%p753_p9), %s682_s23 }
 0x159   : > { %571 = dma.general (%p753_p9), %s418_s28, 1024, %s420_s7, %s394_s20, %s683_s6, [#allocation9], %s684_s8, 0  }
 0x15a PF: > { %s447_s9 = sand.u32 1, %s657_s12   ;;  %p574_p2 = pnand %p532_p11, %p757_p10 }
 0x15b   : > { %s448_s10 = scalar_lea.sflag [#allocation4], %s447_s9 }
 0x15c   : > { %p575_p3 = pneg %p574_p2 }
 0x15e   : > { %652 = dma.done.wait (%p575_p3), %s448_s10, 1024  }
 0x15f   : > { %654 = vsyncadd (%p575_p3), %s448_s10, 4294966272  ;;  %p16_p4 = scmp.ge.s32.totalorder %s730_s18, 4   ;;  %s900_s12 = smov %s661_s13 }
 0x160   : > { %s901_s13 = smov %s665_s14  ;;  %s902_s14 = smov %s742_s21 }
 0x161   : > { %s903_s15 = smov %s730_s18  ;;  %18 = sbr.rel (!%p16_p4) target bundleno = 5 (0x5), region = 93 }
 0x166   :  { %454 = vsyncpa [#allocation3], 1 }
 0x167   :  { %456 = vsyncpa [#allocation3 + $0x1], 1 }
 0x168   :  { %457 = vsyncpa [#allocation4], 1 }
 0x169   :  { %459 = vsyncpa [#allocation4 + $0x1], 1 }

</bundles_post_ra>
